<compile_context>
chip_gen: v5e
topology: v5e:2x2
jax: 0.10.0
libtpu: 0.0.40
codegen_flags: <defaults>
</compile_context>

<pallas_src>
import functools
import math

import jax
import jax.numpy as jnp
from jax.experimental import pallas as pl
from jax.experimental.pallas import tpu as pltpu


# ----------------------------- kernel ----------------------------------------

def _ntxent_kernel(q_ref, k_ref, loss_ref, m_ref, l_ref, pos_ref, *,
                   tk: int, n_valid: int, mask_keys: bool, exp_dtype):
    k_idx = pl.program_id(1)
    nk = pl.num_programs(1)

    # --- per-q-tile init (first key tile) ------------------------------------
    @pl.when(k_idx == 0)
    def _init():
        m_ref[...] = jnp.full_like(m_ref, -jnp.inf)
        l_ref[...] = jnp.zeros_like(l_ref)

    # sim[TK, TQ] = key_tile . query_tile^T  (bf16 operands, f32 accumulation
    # on the MXU).  Keys on sublanes / queries on lanes keeps every per-row
    # statistic lane-dense.
    sim = jax.lax.dot_general(
        k_ref[...], q_ref[...],
        dimension_numbers=(((1,), (1,)), ((), ())),
        preferred_element_type=jnp.float32)

    if mask_keys:
        # Only emitted when N was padded: mask padded key rows out of the lse.
        key_ids = k_idx * tk + jax.lax.broadcasted_iota(jnp.int32, sim.shape, 0)
        sim = jnp.where(key_ids < n_valid, sim, jnp.float32(-1e30))

    # Positive logit (global key 0, i.e. label 0) lives in key tile 0, row 0.
    @pl.when(k_idx == 0)
    def _pos():
        pos_ref[...] = sim[0:1, :]

    # --- online logsumexp over the key (sublane) axis -------------------------
    m_prev = m_ref[...]
    m_new = jnp.maximum(m_prev, jnp.max(sim, axis=0, keepdims=True))
    alpha = jnp.exp(m_prev - m_new)                       # 0 at k_idx == 0
    p = jnp.exp((sim - m_new).astype(exp_dtype))          # bf16 on v6e/v7x
    l_ref[...] = alpha * l_ref[...] + jnp.sum(p.astype(jnp.float32), axis=0,
                                              keepdims=True)
    m_ref[...] = m_new

    # --- finalize per-row loss on the last key tile ---------------------------
    @pl.when(k_idx == nk - 1)
    def _finalize():
        loss_ref[0] = m_ref[...] + jnp.log(l_ref[...]) - pos_ref[...]


# ----------------------------- tuning helpers ---------------------------------

def _device_kind() -> str:
    try:
        return jax.devices()[0].device_kind.lower()
    except Exception:
        return ""


def _default_exp_dtype(kind: str):
    # v6e / v7x EUP has a bf16 path (~2x exp throughput, half the p footprint);
    # v5e and older have no bf16 VPU/EUP path -> keep exp math in f32.
    if ("v5" in kind) or ("v4" in kind) or ("v3" in kind) or ("v2" in kind):
        return jnp.float32
    return jnp.bfloat16


def _vmem_capacity_bytes(kind: str) -> int:
    try:
        return int(pltpu.get_tpu_info().vmem_capacity_bytes)
    except Exception:
        return (64 << 20) if "v7" in kind else (128 << 20)


def _tile_targets(kind: str):
    # (tq_target, tk_target, granularity)
    if "v7" in kind:
        return 512, 1024, 256      # 64 MiB VMEM part, 2x256^2 MXU, 2 TCs
    if ("v5" in kind) or ("v4" in kind):
        return 256, 2048, 128      # 4x128^2 MXU, 128 MiB VMEM
    return 768, 2048, 256          # v6e (and unknown): 2x256^2 MXU, 128 MiB


def _round_up(x: int, m: int) -> int:
    return ((x + m - 1) // m) * m


def _largest_divisor(m: int, target: int) -> int:
    """Largest multiple of 8 that divides m and is <= target (m is a mult of 8)."""
    t = (min(target, m) // 8) * 8
    while t >= 8:
        if m % t == 0:
            return t
        t -= 8
    return 8


def _step_footprint_bytes(tq: int, tk: int, dp: int) -> int:
    in_bytes = 2 * 2 * (tq + tk) * dp          # double-buffered bf16 q & k tiles
    work = 4 * tq * tk * 4                     # sim tile + exp/where temporaries
    stats = 4 * 8 * max(tq, 128) * 4           # m/l/pos scratch + out block
    return in_bytes + work + stats


def _choose_tiles(n, dp, kind, tq_user, tk_user, vmem_budget):
    tq_t, tk_t, gran = _tile_targets(kind)

    if tq_user is not None:
        assert tq_user % 8 == 0, "tq must be a multiple of 8"
        tq = int(tq_user)
    else:
        tq = min(tq_t, _round_up(n, 8))
        if tq >= gran:
            tq = (tq // gran) * gran           # match the MXU width
        if "v7" in kind:
            # 2 TensorCores share the 'parallel' q axis: keep >= 2 query tiles.
            while tq > 8 and _round_up(n, tq) // tq < 2:
                tq = max(8, _round_up(tq // 2, 8))

    n_pad = _round_up(n, tq)

    if tk_user is not None:
        assert tk_user % 8 == 0, "tk must be a multiple of 8"
        tk = int(tk_user)
        n_pad = _round_up(n, (tq * tk) // math.gcd(tq, tk))
    else:
        tk = _largest_divisor(n_pad, min(tk_t, n_pad))
        # Shrink the key tile until the per-step footprint fits the VMEM budget.
        while tk > 8 and _step_footprint_bytes(tq, tk, dp) > vmem_budget:
            tk = _largest_divisor(n_pad, max(8, tk // 2))

    return tq, tk, n_pad


# ----------------------------- wrapper ----------------------------------------

def ntxent_loss(features: jax.Array, temperature: float = 0.1,
                *, tq: int | None = None, tk: int | None = None,
                exp_dtype=None) -> jax.Array:
    """Pallas TPU implementation of NTXentLoss.forward."""
    assert features.ndim == 2, "expected (N, D) features"
    n, d = features.shape
    kind = _device_kind()
    if exp_dtype is None:
        exp_dtype = _default_exp_dtype(kind)

    # --- one-shot prologue (O(N*D), negligible vs the O(N^2*D) kernel) --------
    x = features.astype(jnp.float32)
    sq = jnp.sum(x * x, axis=-1, keepdims=True)
    inv = jnp.minimum(jax.lax.rsqrt(sq), jnp.float32(1e8))    # 1/max(||x||,1e-8)
    q = (x * (inv * jnp.float32(1.0 / temperature))).astype(jnp.bfloat16)
    k = (x * inv).astype(jnp.bfloat16)

    # Lane-dense layout: pad the feature dim to a multiple of 128 with zeros
    # (zeros change neither norms nor dot products, and they are bf16-exact).
    # TODO(synk): on v6e/v7x with D >= 256, rounding Dp to 256 would fill the
    # 2x256^2 MXU better at the cost of extra HBM traffic; not done here.
    dp = max(128, int(pl.cdiv(d, 128)) * 128)

    vmem_ceiling = min(int(0.85 * _vmem_capacity_bytes(kind)), 100 << 20)
    tq, tk, n_pad = _choose_tiles(n, dp, kind, tq, tk, vmem_ceiling)
    grid_q, grid_k = n_pad // tq, n_pad // tk

    pad = ((0, n_pad - n), (0, dp - d))
    if pad != ((0, 0), (0, 0)):
        q = jnp.pad(q, pad)
        k = jnp.pad(k, pad)

    kernel = functools.partial(
        _ntxent_kernel, tk=tk, n_valid=n, mask_keys=(n_pad != n),
        exp_dtype=exp_dtype)

    vmem_limit = min(vmem_ceiling,
                     max(32 << 20,
                         int(1.25 * _step_footprint_bytes(tq, tk, dp)) + (16 << 20)))

    out = pl.pallas_call(
        kernel,
        out_shape=jax.ShapeDtypeStruct((grid_q, 1, tq), jnp.float32),
        grid_spec=pltpu.PrefetchScalarGridSpec(
            num_scalar_prefetch=0,
            grid=(grid_q, grid_k),
            in_specs=[
                # Query tile: block index constant over the key axis -> fetched
                # once per q sweep (resident), streamed as bf16.
                pl.BlockSpec((tq, dp), lambda i, j: (i, 0)),
                # Key tile: streamed per grid step as bf16.
                # TODO(synk): pipeline_mode=pl.Buffered(3) here if a profile
                # still shows exposed key DMA for very small D.
                pl.BlockSpec((tk, dp), lambda i, j: (j, 0)),
            ],
            out_specs=pl.BlockSpec((1, 1, tq), lambda i, j: (i, 0, 0)),
            scratch_shapes=[
                pltpu.VMEM((1, tq), jnp.float32),   # running max  m
                pltpu.VMEM((1, tq), jnp.float32),   # running sum  l
                pltpu.VMEM((1, tq), jnp.float32),   # positive logit sim[0, :]
            ],
        ),
        compiler_params=pltpu.CompilerParams(
            dimension_semantics=("parallel", "arbitrary"),
            vmem_limit_bytes=vmem_limit,
        ),
    )(q, k)

    per_row = out.reshape(-1)[:n]
    return jnp.mean(per_row)


# ----------------------------- references --------------------------------------

def _ntxent_loss_ref_f32(features: jax.Array, temperature: float = 0.1) -> jax.Array:
    """Pure-JAX f32 reference matching the PyTorch module semantics."""
    x = features.astype(jnp.float32)
    norm = jnp.maximum(jnp.linalg.norm(x, axis=-1, keepdims=True), 1e-8)
    xn = x / norm
    sim = (xn @ xn.T) / temperature
    lse = jax.scipy.special.logsumexp(sim, axis=-1)
    return jnp.mean(lse - sim[:, 0])


def _ntxent_loss_ref_mirror(features: jax.Array, temperature: float = 0.1,
                            exp_dtype=jnp.float32) -> jax.Array:
    """Pure-JAX reference mirroring the kernel's numerics (bf16 MXU, f32 acc,
    max-shifted exp in exp_dtype)."""
    x = features.astype(jnp.float32)
    sq = jnp.sum(x * x, axis=-1, keepdims=True)
    inv = jnp.minimum(jax.lax.rsqrt(sq), jnp.float32(1e8))
    q = (x * (inv * jnp.float32(1.0 / temperature))).astype(jnp.bfloat16)
    k = (x * inv).astype(jnp.bfloat16)
    sim = jax.lax.dot_general(q, k, (((1,), (1,)), ((), ())),
                              preferred_element_type=jnp.float32)
    m = jnp.max(sim, axis=-1, keepdims=True)
    p = jnp.exp((sim - m).astype(exp_dtype)).astype(jnp.float32)
    lse = m[:, 0] + jnp.log(jnp.sum(p, axis=-1))
    return jnp.mean(lse - sim[:, 0])


# ----------------------------- self-test ---------------------------------------

if __name__ == "__main__":
    temperature = 0.1
    exp_dtype = _default_exp_dtype(_device_kind())
    key = jax.random.PRNGKey(0)
    k1, k2, k3 = jax.random.split(key, 3)

    # Case 1: tiny single-tile path, consistent with the module usage.
    feats = jax.random.normal(k1, (8, 32), dtype=jnp.float32)
    loss = ntxent_loss(feats, temperature)
    jax.block_until_ready(loss)
    mirror = _ntxent_loss_ref_mirror(feats, temperature, exp_dtype)
    ref = _ntxent_loss_ref_f32(feats, temperature)
    assert jnp.allclose(loss, mirror, rtol=1e-2, atol=1e-2), (loss, mirror)
    assert jnp.allclose(loss, ref, rtol=5e-2, atol=5e-2), (loss, ref)

    # Case 2: exercises the tiled online-logsumexp path (grid = (4, 2)).
    feats2 = jax.random.normal(k2, (32, 96), dtype=jnp.float32)
    loss2 = ntxent_loss(feats2, temperature, tq=8, tk=16)
    jax.block_until_ready(loss2)
    mirror2 = _ntxent_loss_ref_mirror(feats2, temperature, exp_dtype)
    ref2 = _ntxent_loss_ref_f32(feats2, temperature)
    assert jnp.allclose(loss2, mirror2, rtol=1e-2, atol=1e-2), (loss2, mirror2)
    assert jnp.allclose(loss2, ref2, rtol=5e-2, atol=5e-2), (loss2, ref2)

    # Case 3: N not divisible by the tile -> padded keys masked, rows dropped.
    feats3 = jax.random.normal(k3, (20, 48), dtype=jnp.float32)
    loss3 = ntxent_loss(feats3, temperature, tq=8)
    jax.block_until_ready(loss3)
    mirror3 = _ntxent_loss_ref_mirror(feats3, temperature, exp_dtype)
    ref3 = _ntxent_loss_ref_f32(feats3, temperature)
    assert jnp.allclose(loss3, mirror3, rtol=1e-2, atol=1e-2), (loss3, mirror3)
    assert jnp.allclose(loss3, ref3, rtol=5e-2, atol=5e-2), (loss3, ref3)

    print("KERNEL_OK")
</pallas_src>

<mosaic_0001>
module attributes {stable_mosaic.version = 11 : i64} {
  func.func @_ntxent_kernel(%arg0: i32, %arg1: i32, %arg2: memref<8x128xbf16, #tpu.memory_space<vmem>>, %arg3: memref<8x128xbf16, #tpu.memory_space<vmem>>, %arg4: memref<1x1x8xf32, #tpu.memory_space<vmem>>, %arg5: memref<1x8xf32, #tpu.memory_space<vmem>>, %arg6: memref<1x8xf32, #tpu.memory_space<vmem>>, %arg7: memref<1x8xf32, #tpu.memory_space<vmem>>) attributes {dimension_semantics = [#tpu.dimension_semantics<parallel>, #tpu.dimension_semantics<arbitrary>], iteration_bounds = array<i64: 1, 1>, scalar_prefetch = 0 : i64, scratch_operands = 3 : i64, tpu.core_type = #tpu.core_type<tc>, window_params = [{transform_indices = @transform_0, window_bounds = array<i64: 8, 128>}, {transform_indices = @transform_1, window_bounds = array<i64: 8, 128>}, {transform_indices = @transform_2, window_bounds = array<i64: 1, 1, 8>}]} {
    %c0_i32 = arith.constant 0 : i32
    %0 = arith.cmpi eq, %arg1, %c0_i32 : i32
    %1 = arith.extui %0 : i1 to i32
    %c0_i32_0 = arith.constant 0 : i32
    %2 = arith.cmpi ne, %1, %c0_i32_0 : i32
    scf.if %2 {
      %cst_18 = arith.constant 0xFF800000 : f32
      %30 = vector.broadcast %cst_18 : f32 to vector<1x8xf32>
      %c0_19 = arith.constant 0 : index
      %c0_20 = arith.constant 0 : index
      %31 = vector.load %arg5[%c0_19, %c0_20] : memref<1x8xf32, #tpu.memory_space<vmem>>, vector<1x8xf32>
      tpu.vector_store %arg5[%c0_19, %c0_20], %30 {strides = array<i32>} : memref<1x8xf32, #tpu.memory_space<vmem>>, vector<1x8xf32>,
      %cst_21 = arith.constant 0.000000e+00 : f32
      %32 = vector.broadcast %cst_21 : f32 to vector<1x8xf32>
      %c0_22 = arith.constant 0 : index
      %c0_23 = arith.constant 0 : index
      %33 = vector.load %arg6[%c0_22, %c0_23] : memref<1x8xf32, #tpu.memory_space<vmem>>, vector<1x8xf32>
      tpu.vector_store %arg6[%c0_22, %c0_23], %32 {strides = array<i32>} : memref<1x8xf32, #tpu.memory_space<vmem>>, vector<1x8xf32>,
    } else {
    }
    %c0 = arith.constant 0 : index
    %c0_1 = arith.constant 0 : index
    %3 = vector.load %arg3[%c0, %c0_1] : memref<8x128xbf16, #tpu.memory_space<vmem>>, vector<8x128xbf16>
    %c0_2 = arith.constant 0 : index
    %c0_3 = arith.constant 0 : index
    %4 = vector.load %arg2[%c0_2, %c0_3] : memref<8x128xbf16, #tpu.memory_space<vmem>>, vector<8x128xbf16>
    %cst = arith.constant dense<0.000000e+00> : vector<8x8xf32>
    %5 = tpu.matmul %3, %4, %cst {dimension_numbers = #tpu.dot_dimension_numbers<[1], [1], [0], [0], [0, 0, 1, 0], [], []>} : vector<8x128xbf16>, vector<8x128xbf16>, vector<8x8xf32> -> vector<8x8xf32>
    %c0_i32_4 = arith.constant 0 : i32
    %6 = arith.cmpi eq, %arg1, %c0_i32_4 : i32
    %7 = arith.extui %6 : i1 to i32
    %c0_i32_5 = arith.constant 0 : i32
    %8 = arith.cmpi ne, %7, %c0_i32_5 : i32
    scf.if %8 {
      %30 = vector.extract_strided_slice %5 {offsets = [0, 0], sizes = [1, 8], strides = [1, 1]} : vector<8x8xf32> to vector<1x8xf32>
      %c0_18 = arith.constant 0 : index
      %c0_19 = arith.constant 0 : index
      %31 = vector.load %arg7[%c0_18, %c0_19] : memref<1x8xf32, #tpu.memory_space<vmem>>, vector<1x8xf32>
      tpu.vector_store %arg7[%c0_18, %c0_19], %30 {strides = array<i32>} : memref<1x8xf32, #tpu.memory_space<vmem>>, vector<1x8xf32>,
    } else {
    }
    %c0_6 = arith.constant 0 : index
    %c0_7 = arith.constant 0 : index
    %9 = vector.load %arg5[%c0_6, %c0_7] : memref<1x8xf32, #tpu.memory_space<vmem>>, vector<1x8xf32>
    %cst_8 = arith.constant dense<0xFF800000> : vector<8xf32>
    %10 = vector.multi_reduction <maximumf>, %5, %cst_8 [0] : vector<8x8xf32> to vector<8xf32>
    %11 = vector.shape_cast %10 : vector<8xf32> to vector<1x8xf32>
    %12 = arith.maximumf %9, %11 : vector<1x8xf32>
    %13 = arith.subf %9, %12 : vector<1x8xf32>
    %14 = math.exp %13 : vector<1x8xf32>
    %15 = vector.broadcast %12 : vector<1x8xf32> to vector<8x8xf32>
    %16 = arith.subf %5, %15 : vector<8x8xf32>
    %17 = arith.truncf %16 : vector<8x8xf32> to vector<8x8xbf16>
    %18 = math.exp %17 : vector<8x8xbf16>
    %c0_9 = arith.constant 0 : index
    %c0_10 = arith.constant 0 : index
    %19 = vector.load %arg6[%c0_9, %c0_10] : memref<1x8xf32, #tpu.memory_space<vmem>>, vector<1x8xf32>
    %20 = arith.mulf %14, %19 : vector<1x8xf32>
    %21 = arith.extf %18 : vector<8x8xbf16> to vector<8x8xf32>
    %cst_11 = arith.constant dense<0.000000e+00> : vector<8xf32>
    %22 = vector.multi_reduction <add>, %21, %cst_11 [0] : vector<8x8xf32> to vector<8xf32>
    %23 = vector.shape_cast %22 : vector<8xf32> to vector<1x8xf32>
    %24 = arith.addf %20, %23 : vector<1x8xf32>
    %c0_12 = arith.constant 0 : index
    %c0_13 = arith.constant 0 : index
    %25 = vector.load %arg6[%c0_12, %c0_13] : memref<1x8xf32, #tpu.memory_space<vmem>>, vector<1x8xf32>
    tpu.vector_store %arg6[%c0_12, %c0_13], %24 {strides = array<i32>} : memref<1x8xf32, #tpu.memory_space<vmem>>, vector<1x8xf32>,
    %c0_14 = arith.constant 0 : index
    %c0_15 = arith.constant 0 : index
    %26 = vector.load %arg5[%c0_14, %c0_15] : memref<1x8xf32, #tpu.memory_space<vmem>>, vector<1x8xf32>
    tpu.vector_store %arg5[%c0_14, %c0_15], %12 {strides = array<i32>} : memref<1x8xf32, #tpu.memory_space<vmem>>, vector<1x8xf32>,
    %c0_i32_16 = arith.constant 0 : i32
    %27 = arith.cmpi eq, %arg1, %c0_i32_16 : i32
    %28 = arith.extui %27 : i1 to i32
    %c0_i32_17 = arith.constant 0 : i32
    %29 = arith.cmpi ne, %28, %c0_i32_17 : i32
    scf.if %29 {
      %c0_18 = arith.constant 0 : index
      %c0_19 = arith.constant 0 : index
      %30 = vector.load %arg5[%c0_18, %c0_19] : memref<1x8xf32, #tpu.memory_space<vmem>>, vector<1x8xf32>
      %c0_20 = arith.constant 0 : index
      %c0_21 = arith.constant 0 : index
      %31 = vector.load %arg6[%c0_20, %c0_21] : memref<1x8xf32, #tpu.memory_space<vmem>>, vector<1x8xf32>
      %32 = math.log %31 : vector<1x8xf32>
      %33 = arith.addf %30, %32 : vector<1x8xf32>
      %c0_22 = arith.constant 0 : index
      %c0_23 = arith.constant 0 : index
      %34 = vector.load %arg7[%c0_22, %c0_23] : memref<1x8xf32, #tpu.memory_space<vmem>>, vector<1x8xf32>
      %35 = arith.subf %33, %34 : vector<1x8xf32>
      %c0_24 = arith.constant 0 : index
      %c0_25 = arith.constant 0 : index
      %c0_26 = arith.constant 0 : index
      %36 = vector.load %arg4[%c0_24, %c0_25, %c0_26] : memref<1x1x8xf32, #tpu.memory_space<vmem>>, vector<1x1x8xf32>
      %37 = vector.shape_cast %36 : vector<1x1x8xf32> to vector<1x8xf32>
      %38 = vector.shape_cast %35 : vector<1x8xf32> to vector<1x1x8xf32>
      tpu.vector_store %arg4[%c0_24, %c0_25, %c0_26], %38 {strides = array<i32>} : memref<1x1x8xf32, #tpu.memory_space<vmem>>, vector<1x1x8xf32>,
    } else {
    }
    return
  }
  func.func @transform_0(%arg0: i32, %arg1: i32) -> (i32, i32) {
    %c0_i32 = arith.constant 0 : i32
    %c0_i32_0 = arith.constant 0 : i32
    return %arg0, %c0_i32 : i32, i32
  }
  func.func @transform_1(%arg0: i32, %arg1: i32) -> (i32, i32) {
    %c0_i32 = arith.constant 0 : i32
    %c0_i32_0 = arith.constant 0 : i32
    return %arg1, %c0_i32 : i32, i32
  }
  func.func @transform_2(%arg0: i32, %arg1: i32) -> (i32, i32, i32) {
    %c0_i32 = arith.constant 0 : i32
    %c0_i32_0 = arith.constant 0 : i32
    %c0_i32_1 = arith.constant 0 : i32
    return %arg0, %c0_i32, %c0_i32_0 : i32, i32, i32
  }
}

</mosaic_0001>

<bundles_post_ra>
// kernel: tpu_custom_call.1
= control target key start
LH: loop header
LB: loop body
LE: loop exit
PB: predicated region body
PF: predicated region fallthrough
CT: control target
= control target key end

     0   :  { %7 = vsyncpa [#allocation6], 0  ;;  %s259_s0 = inlined_call_operand.hbm [shape: bf16[8,128], index: 0, kind: input, shape index: {}]   ;;  %s260_s1 = inlined_call_operand.hbm [shape: bf16[8,128], index: 1, kind: input, shape index: {}]   ;;  %s261_s2 = inlined_call_operand.hbm [shape: f32[1,1,8], index: 2, kind: output, shape index: {}]  }
   0x1   :  { %8 = vsyncpa [#allocation9], 0 }
   0x2   :  { %9 = vsyncpa [#allocation7], 0  ;;  %s15_s11 = sshll.u32 %s259_s0, 4  ;;  %s222_s12 = smov [#allocation5]   ;;  %s16_s11 = int_to_ptr.hbm [resolvable:$true] %s15_s11 }
   0x3   :  { %s17_s13 = sshll.u32 %s222_s12, 4  ;;  %s26_s16 = sshll.u32 %s260_s1, 4  ;;  %s18_s13 = int_to_ptr.vmem [resolvable:$true] %s17_s13  ;;  %s27_s16 = int_to_ptr.hbm [resolvable:$true] %s26_s16 }
   0x4   :  { %20 = dma.hbm_to_vmem [thread:$0]  %s16_s11, 64, %s18_s13, [#allocation6]  }
   0x5   :  { %s223_s17 = smov [#allocation8]  }
   0x6   :  { %s28_s18 = sshll.u32 %s223_s17, 4  ;;  %s29_s18 = int_to_ptr.vmem [resolvable:$true] %s28_s18 }
   0x7   :  { %31 = dma.hbm_to_vmem [thread:$0]  %s27_s16, 64, %s29_s18, [#allocation9]  }
   0x8   :  { %216 = dma.done.wait [#allocation6], 64  }
   0x9   :  { %217 = vsyncadd [#allocation6], 4294967232 }
   0xa   :  { %218 = dma.done.wait [#allocation9], 64  }
   0xb   :  { %219 = vsyncadd [#allocation9], 4294967232  ;;  %vm45_vm0 = vcmask 57344   ;;  %v224_v0 = vmov -inf   ;;  %v225_v1 = vmov 0.0   ;;  %vm69_vm1 = vcmask 64512  }
   0xc   :  { %46 = vst.msk [vmem:[#allocation2] sm:$0x1] %vm45_vm0, %v224_v0  ;;  %v49_v2 = vld [vmem:[#allocation5] sm:$0xf]  ;;  %v48_v3 = vld [vmem:[#allocation8] sm:$0xf] }
   0xd   :  { %47 = vst.msk [vmem:[#allocation3] sm:$0x1] %vm45_vm0, %v225_v1  ;;  %57 = vmatpush.bf16.xpose.msra.mxu0 %v49_v2  ;;  %s226_s0 = smov [#allocation10]   ;;  %s122_s21 = sshll.u32 %s261_s2, 4  ;;  %s123_s21 = int_to_ptr.hbm [resolvable:$true] %s122_s21 }
   0xe   :  { %s120_s1 = sshll.u32 %s226_s0, 4  ;;  %s121_s1 = int_to_ptr.vmem [resolvable:$true] %s120_s1 }
  0x13   :  { %v68_v12 = vld [vmem:[#allocation2] sm:$0x1] }
  0x14   :  { %58 = vmatmul.bf16.vlgmr.msra.gmra.mxu0 %v48_v3  ;;  %v90_v31 = vld [vmem:[#allocation3] sm:$0x1] }
  0x91   :  { %v59_v4 = vpop.f32.mrf.mxu0 }
  0x92   :  { %67 = vst.msk [vmem:[#allocation4] sm:$0x1] %vm45_vm0, %v59_v4  ;;  %v70_v5 = vsel %vm69_vm1, %v59_v4, -inf }
  0x93   :  { %v71_v6 = vrot.slane %v70_v5, 4 }
  0x95   :  { %v72_v7 = vmax.f32 %v70_v5, %v71_v6 }
  0x97   :  { %v73_v8 = vrot.slane %v72_v7, 2 }
  0x99   :  { %v74_v9 = vmax.f32 %v72_v7, %v73_v8  ;;  %v61_v10 = vpop.f32.mrf.mxu0  ;;  %v112_v41 = vld [vmem:[#allocation4] sm:$0x1] }
  0x9b   :  { %v75_v11 = vrot.slane %v74_v9, 1 }
  0x9d   :  { %v76_v13 = vmax.f32 %v74_v9, %v75_v11 }
  0x9f   :  { %v77_v14 = vmax.f32 %v68_v12, %v76_v13 }
  0xa1   :  { %v82_v15 = vperm.slane %v77_v14, 0  ;;  %103 = vst.msk [vmem:[#allocation2] sm:$0x1] %vm45_vm0, %v77_v14  ;;  %v78_v20 = vsub.f32 %v68_v12, %v77_v14 }
  0xa3   :  { %v84_v16 = vsub.f32 %v59_v4, %v82_v15  ;;  %v79_v23 = vmul.f32 1.442695, %v78_v20 }
  0xa5   :  { %v85_v17 = vpack.c.bf16 %v84_v16, %v84_v16 }
  0xa7   :  { %v86_v18 = vunpack.c.l.bf16 %v85_v17 }
  0xa8   :  { %v107_v39 = vld [vmem:[#allocation2] sm:$0x1] }
  0xa9   :  { %v87_v19 = vmul.f32 1.442695, %v86_v18 }
  0xab   :  { %138 = vpow2.f32 %v87_v19 }
  0xac   :  { %140 = vpow2.f32 %v79_v23 }
  0xb1   :  { %v139_v21 = vpop.eup %138 }
  0xb2   :  { %v89_v22 = vpack.c.bf16 %v139_v21, %v139_v21  ;;  %v141_v30 = vpop.eup %140 }
  0xb3   :  { %v91_v33 = vmul.f32 %v141_v30, %v90_v31 }
  0xb4   :  { %v92_v24 = vunpack.c.l.bf16 %v89_v22 }
  0xb6   :  { %v93_v25 = vsel %vm69_vm1, %v92_v24, 0.0 }
  0xb7   :  { %v94_v26 = vrot.slane %v93_v25, 4 }
  0xb9   :  { %v95_v27 = vadd.f32 %v94_v26, %v93_v25 }
  0xbb   :  { %v96_v28 = vrot.slane %v95_v27, 2 }
  0xbd   :  { %v97_v29 = vadd.f32 %v96_v28, %v95_v27 }
  0xbf   :  { %v98_v32 = vrot.slane %v97_v29, 1 }
  0xc1   :  { %v99_v34 = vadd.f32 %v98_v32, %v97_v29 }
  0xc3   :  { %v100_v35 = vadd.f32 %v99_v34, %v91_v33 }
  0xc5   :  { %102 = vst.msk [vmem:[#allocation3] sm:$0x1] %vm45_vm0, %v100_v35 }
  0xcc   :  { %v108_v36 = vld [vmem:[#allocation3] sm:$0x1] }
  0xcd   :  { %142 = vlog2.f32 %v108_v36 }
  0xd3   :  { %v143_v37 = vpop.eup %142 }
  0xd4   :  { %v110_v38 = vmul.f32 0.6931472, %v143_v37 }
  0xd6   :  { %v111_v40 = vadd.f32 %v110_v38, %v107_v39 }
  0xd8   :  { %v113_v42 = vsub.f32 %v111_v40, %v112_v41 }
  0xda   :  { %114 = vst.msk [vmem:[#allocation10] sm:$0x1] %vm45_vm0, %v113_v42 }
  0xdb   :  { %125 = dma.vmem_to_hbm [thread:$0]  %s121_s1, 16, %s123_s21, [#allocation7]  }
  0xdc   :  { %220 = dma.done.wait [#allocation7], 16  }
  0xdd   :  { %221 = vsyncadd [#allocation7], 4294967280 }
  0xde   :  { %130 = vsyncpa [#allocation6], 1 }
  0xdf   :  { %131 = vsyncpa [#allocation9], 1 }
  0xe0   :  { %132 = vsyncpa [#allocation7], 1 }

</bundles_post_ra>
